<compile_context>
chip_gen: v7x
topology: tpu7x:2x2x1
jax: 0.10.0
libtpu: 0.0.40
codegen_flags: <defaults>
</compile_context>

<pallas_src>
import jax
import jax.numpy as jnp
from jax.experimental import pallas as pl
from jax.experimental.pallas import tpu as pltpu


def _round_up(x, m):
    return ((x + m - 1) // m) * m


# ----------------------------- kernels -------------------------------------


def _ffn_kernel_f32_out(x_ref, w1_ref, b1_ref, w2_ref, b2_ref, o_ref):
    """f32 output: accumulate straight into o_ref (resident across the H sweep)."""
    h_idx = pl.program_id(1)

    @pl.when(h_idx == 0)
    def _():
        # Fold the second bias into accumulator init (hoisted out of the reduction).
        o_ref[...] = jnp.broadcast_to(
            b2_ref[...].astype(jnp.float32), o_ref.shape)

    # First GEMM on the MXU (f32 accumulation); bias + ReLU on the VPU.
    h = jnp.dot(x_ref[...], w1_ref[...], preferred_element_type=jnp.float32)
    h = jnp.maximum(h + b1_ref[...].astype(jnp.float32), 0.0)

    # Second GEMM: accumulate this H-tile's (TM, E) partial contribution.
    # If params are bf16 the activations are intentionally downcast (f32 acc kept).
    o_ref[...] += jnp.dot(h.astype(w2_ref.dtype), w2_ref[...],
                          preferred_element_type=jnp.float32)


def _ffn_kernel_acc(x_ref, w1_ref, b1_ref, w2_ref, b2_ref, o_ref, acc_ref):
    """Generic output dtype: f32 accumulator in VMEM scratch, cast on the last step."""
    h_idx = pl.program_id(1)

    @pl.when(h_idx == 0)
    def _():
        acc_ref[...] = jnp.broadcast_to(
            b2_ref[...].astype(jnp.float32), acc_ref.shape)

    h = jnp.dot(x_ref[...], w1_ref[...], preferred_element_type=jnp.float32)
    h = jnp.maximum(h + b1_ref[...].astype(jnp.float32), 0.0)
    acc_ref[...] += jnp.dot(h.astype(w2_ref.dtype), w2_ref[...],
                            preferred_element_type=jnp.float32)

    @pl.when(h_idx == pl.num_programs(1) - 1)
    def _():
        o_ref[...] = acc_ref[...].astype(o_ref.dtype)


# -------------------------- tile / HW heuristics ----------------------------


def _hw_config():
    try:
        kind = jax.devices()[0].device_kind.lower()
    except Exception:
        kind = ""
    if "v7" in kind:
        # 64 MiB physical VMEM per TC: modest tiles, headroom, >=2 M tiles.
        return dict(align=256, vmem_limit=48 << 20, budget=40 << 20,
                    tm_bf16=512, tm_f32=256, two_m_tiles=True)
    if "v6" in kind:
        # 128 MiB physical; raise the 32 MiB scoped default so weights fit resident.
        return dict(align=256, vmem_limit=100 << 20, budget=88 << 20,
                    tm_bf16=1024, tm_f32=512, two_m_tiles=False)
    if "v5" in kind:
        # 128 MiB physical but a 16 MiB scoped default; MXU is 128-wide.
        return dict(align=128, vmem_limit=100 << 20, budget=88 << 20,
                    tm_bf16=512, tm_f32=384, two_m_tiles=False)
    # Unknown backend: conservative defaults.
    return dict(align=128, vmem_limit=48 << 20, budget=40 << 20,
                tm_bf16=512, tm_f32=256, two_m_tiles=False)


def _choose_tiles(M, E_pad, H, x_bytes, w_bytes, o_bytes, use_scratch, cfg):
    align, budget = cfg["align"], cfg["budget"]

    def working_set(tm, th):
        s = 2 * tm * E_pad * x_bytes          # x tile (double-buffered)
        s += 2 * tm * E_pad * o_bytes         # out tile (double-buffered)
        if use_scratch:
            s += tm * E_pad * 4               # f32 accumulator scratch
        s += 2 * (E_pad * th + th * E_pad + th + E_pad) * w_bytes  # w1/w2/b1/b2
        return s

    # TM candidates: one sublane-aligned tile for small M, otherwise multiples of
    # `align`, preferring the candidate that minimizes M padding, then the largest.
    if M <= align:
        tm_cands = [_round_up(M, 8)]
    else:
        tm_cap = cfg["tm_bf16"] if w_bytes < 4 else cfg["tm_f32"]
        if cfg["two_m_tiles"]:
            # Ensure >= 2 M tiles so the "parallel" axis shards across both TCs.
            tm_cap = min(tm_cap, _round_up(pl.cdiv(M, 2), align))
        tm_cap = max(tm_cap, align)
        cands = list(range(align, tm_cap + 1, align))
        tm_cands = sorted(cands, key=lambda t: (_round_up(M, t), -t))

    H_128 = _round_up(H, 128)
    for tm in tm_cands:
        # Preferred: weights fully VMEM-resident (TH == H) -> DMA'd once, reused
        # by every M tile (removes the dominant HBM traffic term).
        if working_set(tm, H) <= budget:
            return tm, H, H
        # Otherwise stream the H (reduction) axis in lane-aligned tiles.
        for th in (512, 256, 128):
            if H_128 % th == 0 and working_set(tm, th) <= budget:
                return tm, th, H_128
    # Last resort: smallest tiles; let the compiler complain if even this
    # exceeds the requested VMEM limit.
    return min(tm_cands), 128, H_128


# ------------------------------ wrapper -------------------------------------


def feed_forward(x, w1, b1, w2, b2):
    """x: (B, S, E). Weights stored (in, out) == torch weight.T. Returns (B, S, E)."""
    B, S, E = x.shape
    H = w1.shape[1]
    M = B * S
    out_dtype = x.dtype

    # Cast activations once to the weight dtype so both GEMMs stay on the native
    # MXU path (accumulation stays f32 inside the kernel).
    x2d = x.reshape(M, E)
    if x2d.dtype != w1.dtype:
        x2d = x2d.astype(w1.dtype)

    cfg = _hw_config()
    use_scratch = out_dtype != jnp.float32

    # Lane-dense padding of the model dim (no-op when E % 128 == 0).
    E_pad = _round_up(E, 128)

    x_bytes = jnp.dtype(x2d.dtype).itemsize
    w_bytes = jnp.dtype(w1.dtype).itemsize
    o_bytes = jnp.dtype(out_dtype).itemsize

    TM, TH, H_pad = _choose_tiles(M, E_pad, H, x_bytes, w_bytes, o_bytes,
                                  use_scratch, cfg)
    M_pad = _round_up(M, TM)

    # Zero-padding: padded x columns / w1 rows / w2 columns / b2 lanes contribute
    # exactly zero; padded M rows are sliced off. All no-ops when already aligned.
    if M_pad != M or E_pad != E:
        x2d = jnp.pad(x2d, ((0, M_pad - M), (0, E_pad - E)))
    if E_pad != E or H_pad != H:
        w1 = jnp.pad(w1, ((0, E_pad - E), (0, H_pad - H)))
        w2 = jnp.pad(w2, ((0, H_pad - H), (0, E_pad - E)))
        b2 = jnp.pad(b2, (0, E_pad - E))
    if H_pad != H:
        b1 = jnp.pad(b1, (0, H_pad - H))

    b1_2d = b1.reshape(1, H_pad)
    b2_2d = b2.reshape(1, E_pad)

    n_m, n_h = M_pad // TM, H_pad // TH
    grid = (n_m, n_h)

    # Real HBM traffic: weights fetched once when resident (n_h == 1), else
    # re-streamed for every M tile.
    weight_reps = 1 if n_h == 1 else n_m
    cost = pl.CostEstimate(
        flops=4 * M_pad * E_pad * H_pad,  # two GEMMs
        transcendentals=0,
        bytes_accessed=(x_bytes * M_pad * E_pad
                        + o_bytes * M_pad * E_pad
                        + w_bytes * weight_reps * (2 * E_pad * H_pad + H_pad + E_pad)),
    )

    kernel = _ffn_kernel_acc if use_scratch else _ffn_kernel_f32_out
    scratch = [pltpu.VMEM((TM, E_pad), jnp.float32)] if use_scratch else []

    out2d = pl.pallas_call(
        kernel,
        out_shape=jax.ShapeDtypeStruct((M_pad, E_pad), out_dtype),
        grid=grid,
        in_specs=[
            pl.BlockSpec((TM, E_pad), lambda i, h: (i, 0)),   # x tile (pipelined over M)
            pl.BlockSpec((E_pad, TH), lambda i, h: (0, h)),   # w1 (resident when n_h==1)
            pl.BlockSpec((1, TH), lambda i, h: (0, h)),       # b1
            pl.BlockSpec((TH, E_pad), lambda i, h: (h, 0)),   # w2 (resident when n_h==1)
            pl.BlockSpec((1, E_pad), lambda i, h: (0, 0)),    # b2 (resident)
        ],
        out_specs=pl.BlockSpec((TM, E_pad), lambda i, h: (i, 0)),
        scratch_shapes=scratch,
        compiler_params=pltpu.CompilerParams(
            dimension_semantics=("parallel", "arbitrary"),
            vmem_limit_bytes=cfg["vmem_limit"],
        ),
        cost_estimate=cost,
    )(x2d, w1, b1_2d, w2, b2_2d)

    return out2d[:M, :E].reshape(B, S, E)


def init_params(key, embed_size, ff_hidden_size, dtype=jnp.float32):
    """Deterministic init mirroring nn.Linear's uniform(-1/sqrt(fan_in), 1/sqrt(fan_in))."""
    k1, k2, k3, k4 = jax.random.split(key, 4)
    lim1 = 1.0 / (embed_size ** 0.5)
    lim2 = 1.0 / (ff_hidden_size ** 0.5)
    # Stored as (in_features, out_features) == torch weight.T
    w1 = jax.random.uniform(k1, (embed_size, ff_hidden_size), dtype, -lim1, lim1)
    b1 = jax.random.uniform(k2, (ff_hidden_size,), dtype, -lim1, lim1)
    w2 = jax.random.uniform(k3, (ff_hidden_size, embed_size), dtype, -lim2, lim2)
    b2 = jax.random.uniform(k4, (embed_size,), dtype, -lim2, lim2)
    return w1, b1, w2, b2


if __name__ == "__main__":
    jax.config.update("jax_default_matmul_precision", "highest")
    key = jax.random.PRNGKey(0)

    def _check(batch, seq, embed_size, ff_hidden_size, tol):
        kx, kp = jax.random.split(jax.random.fold_in(key, embed_size))
        x = jax.random.normal(kx, (batch, seq, embed_size), jnp.float32)
        w1, b1, w2, b2 = init_params(kp, embed_size, ff_hidden_size)
        out = jax.block_until_ready(feed_forward(x, w1, b1, w2, b2))
        ref = jnp.maximum(x.reshape(-1, embed_size) @ w1 + b1, 0.0) @ w2 + b2
        ref = ref.reshape(batch, seq, embed_size)
        assert out.shape == (batch, seq, embed_size)
        err = float(jnp.max(jnp.abs(out - ref)))
        assert jnp.allclose(out, ref, atol=tol, rtol=tol), f"max abs err {err}"

    # Small demo shape matching the PyTorch module usage (resident-weight path).
    _check(batch=2, seq=8, embed_size=32, ff_hidden_size=64, tol=1e-5)
    # Larger shape exercising multi-tile M grid + resident/streamed weight logic.
    _check(batch=4, seq=128, embed_size=256, ff_hidden_size=1024, tol=1e-3)

    print("KERNEL_OK")
</pallas_src>

<mosaic_0001>
module attributes {stable_mosaic.version = 11 : i64} {
  func.func @_ffn_kernel_f32_out(%arg0: i32, %arg1: i32, %arg2: memref<16x128xf32, #tpu.memory_space<vmem>>, %arg3: memref<128x64xf32, #tpu.memory_space<vmem>>, %arg4: memref<1x64xf32, #tpu.memory_space<vmem>>, %arg5: memref<64x128xf32, #tpu.memory_space<vmem>>, %arg6: memref<1x128xf32, #tpu.memory_space<vmem>>, %arg7: memref<16x128xf32, #tpu.memory_space<vmem>>) attributes {dimension_semantics = [#tpu.dimension_semantics<parallel>, #tpu.dimension_semantics<arbitrary>], iteration_bounds = array<i64: 1, 1>, scalar_prefetch = 0 : i64, scratch_operands = 0 : i64, tpu.core_type = #tpu.core_type<tc>, window_params = [{transform_indices = @transform_0, window_bounds = array<i64: 16, 128>}, {transform_indices = @transform_1, window_bounds = array<i64: 128, 64>}, {transform_indices = @transform_2, window_bounds = array<i64: 1, 64>}, {transform_indices = @transform_3, window_bounds = array<i64: 64, 128>}, {pipeline_mode = #tpu.pipeline_mode<synchronous>, transform_indices = @transform_4, window_bounds = array<i64: 1, 128>}, {transform_indices = @transform_5, window_bounds = array<i64: 16, 128>}]} {
    %c0_i32 = arith.constant 0 : i32
    %0 = arith.cmpi eq, %arg1, %c0_i32 : i32
    %1 = arith.extui %0 : i1 to i32
    %c0_i32_0 = arith.constant 0 : i32
    %2 = arith.cmpi ne, %1, %c0_i32_0 : i32
    scf.if %2 {
      %c0_14 = arith.constant 0 : index
      %c0_15 = arith.constant 0 : index
      %16 = vector.load %arg6[%c0_14, %c0_15] : memref<1x128xf32, #tpu.memory_space<vmem>>, vector<1x128xf32>
      %17 = vector.shape_cast %16 : vector<1x128xf32> to vector<1x128xf32>
      %18 = vector.broadcast %17 : vector<1x128xf32> to vector<16x128xf32>
      %c0_16 = arith.constant 0 : index
      %c0_17 = arith.constant 0 : index
      %19 = vector.load %arg7[%c0_16, %c0_17] : memref<16x128xf32, #tpu.memory_space<vmem>>, vector<16x128xf32>
      tpu.vector_store %arg7[%c0_16, %c0_17], %18 {strides = array<i32>} : memref<16x128xf32, #tpu.memory_space<vmem>>, vector<16x128xf32>,
    } else {
    }
    %c0 = arith.constant 0 : index
    %c0_1 = arith.constant 0 : index
    %3 = vector.load %arg2[%c0, %c0_1] : memref<16x128xf32, #tpu.memory_space<vmem>>, vector<16x128xf32>
    %c0_2 = arith.constant 0 : index
    %c0_3 = arith.constant 0 : index
    %4 = vector.load %arg3[%c0_2, %c0_3] : memref<128x64xf32, #tpu.memory_space<vmem>>, vector<128x64xf32>
    %cst = arith.constant dense<0.000000e+00> : vector<16x64xf32>
    %5 = tpu.matmul %3, %4, %cst {dimension_numbers = #tpu.dot_dimension_numbers<[1], [0], [0], [1], [0, 0, 1, 1], [], []>, precision = #tpu.contract_precision<fp32>} : vector<16x128xf32>, vector<128x64xf32>, vector<16x64xf32> -> vector<16x64xf32>
    %c0_4 = arith.constant 0 : index
    %c0_5 = arith.constant 0 : index
    %6 = vector.load %arg4[%c0_4, %c0_5] : memref<1x64xf32, #tpu.memory_space<vmem>>, vector<1x64xf32>
    %7 = vector.broadcast %6 : vector<1x64xf32> to vector<16x64xf32>
    %8 = arith.addf %5, %7 : vector<16x64xf32>
    %cst_6 = arith.constant 0.000000e+00 : f32
    %9 = vector.broadcast %cst_6 : f32 to vector<16x64xf32>
    %10 = arith.maximumf %8, %9 : vector<16x64xf32>
    %c0_7 = arith.constant 0 : index
    %c0_8 = arith.constant 0 : index
    %11 = vector.load %arg7[%c0_7, %c0_8] : memref<16x128xf32, #tpu.memory_space<vmem>>, vector<16x128xf32>
    %c0_9 = arith.constant 0 : index
    %c0_10 = arith.constant 0 : index
    %12 = vector.load %arg5[%c0_9, %c0_10] : memref<64x128xf32, #tpu.memory_space<vmem>>, vector<64x128xf32>
    %cst_11 = arith.constant dense<0.000000e+00> : vector<16x128xf32>
    %13 = tpu.matmul %10, %12, %cst_11 {dimension_numbers = #tpu.dot_dimension_numbers<[1], [0], [0], [1], [0, 0, 1, 1], [], []>, precision = #tpu.contract_precision<fp32>} : vector<16x64xf32>, vector<64x128xf32>, vector<16x128xf32> -> vector<16x128xf32>
    %14 = arith.addf %11, %13 : vector<16x128xf32>
    %c0_12 = arith.constant 0 : index
    %c0_13 = arith.constant 0 : index
    %15 = vector.load %arg7[%c0_12, %c0_13] : memref<16x128xf32, #tpu.memory_space<vmem>>, vector<16x128xf32>
    tpu.vector_store %arg7[%c0_12, %c0_13], %14 {strides = array<i32>} : memref<16x128xf32, #tpu.memory_space<vmem>>, vector<16x128xf32>,
    return
  }
  func.func @transform_0(%arg0: i32, %arg1: i32) -> (i32, i32) {
    %c0_i32 = arith.constant 0 : i32
    %c0_i32_0 = arith.constant 0 : i32
    return %arg0, %c0_i32 : i32, i32
  }
  func.func @transform_1(%arg0: i32, %arg1: i32) -> (i32, i32) {
    %c0_i32 = arith.constant 0 : i32
    %c0_i32_0 = arith.constant 0 : i32
    return %c0_i32, %arg1 : i32, i32
  }
  func.func @transform_2(%arg0: i32, %arg1: i32) -> (i32, i32) {
    %c0_i32 = arith.constant 0 : i32
    %c0_i32_0 = arith.constant 0 : i32
    return %c0_i32, %arg1 : i32, i32
  }
  func.func @transform_3(%arg0: i32, %arg1: i32) -> (i32, i32) {
    %c0_i32 = arith.constant 0 : i32
    %c0_i32_0 = arith.constant 0 : i32
    return %arg1, %c0_i32 : i32, i32
  }
  func.func @transform_4(%arg0: i32, %arg1: i32) -> (i32, i32) {
    %c0_i32 = arith.constant 0 : i32
    %c0_i32_0 = arith.constant 0 : i32
    %c0_i32_1 = arith.constant 0 : i32
    return %c0_i32, %c0_i32_0 : i32, i32
  }
  func.func @transform_5(%arg0: i32, %arg1: i32) -> (i32, i32) {
    %c0_i32 = arith.constant 0 : i32
    %c0_i32_0 = arith.constant 0 : i32
    return %arg0, %c0_i32 : i32, i32
  }
}

</mosaic_0001>

<bundles_post_ra>
// kernel: tpu_custom_call.1
= control target key start
LH: loop header
LB: loop body
LE: loop exit
PB: predicated region body
PF: predicated region fallthrough
CT: control target
= control target key end

     0   :  { %s2584_s0 = inlined_call_operand.vmem [shape: f32[16,128], index: 0, kind: input, shape index: {}]   ;;  %s2585_s1 = inlined_call_operand.vmem [shape: f32[128,64], index: 1, kind: input, shape index: {}]   ;;  %s2586_s2 = inlined_call_operand.vmem [shape: f32[1,64], index: 2, kind: input, shape index: {}]   ;;  %s2587_s3 = inlined_call_operand.vmem [shape: f32[64,128], index: 3, kind: input, shape index: {}]   ;;  %s2588_s4 = inlined_call_operand.vmem [shape: f32[1,128], index: 4, kind: input, shape index: {}]   ;;  %s2589_s5 = inlined_call_operand.hbm [shape: f32[16,128], index: 5, kind: output, shape index: {}]  }
   0x1   :  { %v36_v0 = vld [vmem:[%s2585_s1] sm:$0xff]  ;;  %v37_v1 = vld [vmem:[%s2585_s1 + $0x8] sm:$0xff]  ;;  %v38_v2 = vld [vmem:[%s2585_s1 + $0x10] sm:$0xff] }
   0x2   :  { %v60_v3 = vand.u32 4294901760, %v36_v0  ;;  %v63_v4 = vand.u32 4294901760, %v37_v1  ;;  %v39_v5 = vld [vmem:[%s2585_s1 + $0x18] sm:$0xff]  ;;  %v66_v6 = vand.u32 4294901760, %v38_v2  ;;  %v40_v7 = vld [vmem:[%s2585_s1 + $0x20] sm:$0xff]  ;;  %v41_v8 = vld [vmem:[%s2585_s1 + $0x28] sm:$0xff] }
   0x3   :  { %v69_v9 = vand.u32 4294901760, %v39_v5  ;;  %v72_v10 = vand.u32 4294901760, %v40_v7  ;;  %v75_v11 = vand.u32 4294901760, %v41_v8  ;;  %v42_v16 = vld [vmem:[%s2585_s1 + $0x30] sm:$0xff]  ;;  %v43_v17 = vld [vmem:[%s2585_s1 + $0x38] sm:$0xff] }
   0x4   :  { %v2244_v12 = vpack.c.bf16 %v63_v4, %v60_v3  ;;  %v2246_v13 = vsub.f32 %v36_v0, %v60_v3  ;;  %v2248_v14 = vsub.f32 %v37_v1, %v63_v4  ;;  %v2250_v15 = vsub.f32 %v38_v2, %v66_v6 }
   0x5   :  { %v2258_v18 = vpack.c.bf16 %v69_v9, %v66_v6  ;;  %v2260_v19 = vsub.f32 %v39_v5, %v69_v9  ;;  %v2262_v20 = vsub.f32 %v40_v7, %v72_v10  ;;  %v2267_v24 = vsub.f32 %v41_v8, %v75_v11 }
   0x6   :  { %v163_v21 = vand.u32 4294901760, %v2246_v13  ;;  %v170_v22 = vand.u32 4294901760, %v2248_v14  ;;  %v177_v23 = vand.u32 4294901760, %v2250_v15  ;;  %1857 = vmatprep.subr.bf16.mxu1 %v2244_v12  ;;  %v78_v27 = vand.u32 4294901760, %v42_v16 }
   0x7   :  { %v184_v25 = vand.u32 4294901760, %v2260_v19  ;;  %v191_v26 = vand.u32 4294901760, %v2262_v20  ;;  %v81_v28 = vand.u32 4294901760, %v43_v17  ;;  %1859 = vmatpush3.bf16.msra.mxu1 %v2244_v12 }
   0x8   :  { %10 = vsyncpa [#allocation3], 0  ;;  %v164_v29 = vsub.f32 %v2246_v13, %v163_v21  ;;  %v171_v30 = vsub.f32 %v2248_v14, %v170_v22  ;;  %v178_v31 = vsub.f32 %v2250_v15, %v177_v23  ;;  %v198_v32 = vand.u32 4294901760, %v2267_v24  ;;  %1861 = vmatprep.subr.bf16.mxu1 %v2258_v18  ;;  %v44_v37 = vld [vmem:[%s2585_s1 + $0x40] sm:$0xff]  ;;  %v45_v38 = vld [vmem:[%s2585_s1 + $0x48] sm:$0xff]  ;;  %s2193_s20 = smov [#allocation2]  }
   0x9   :  { %v185_v33 = vsub.f32 %v2260_v19, %v184_v25  ;;  %v2287_v34 = vpack.c.bf16 %v75_v11, %v72_v10  ;;  %v192_v35 = vsub.f32 %v2262_v20, %v191_v26  ;;  %v2292_v36 = vsub.f32 %v42_v16, %v78_v27  ;;  %v2306_v43 = vld [vmem:[%s2585_s1 + $0x50] sm:$0xff]  ;;  %v47_v52 = vld [vmem:[%s2585_s1 + $0x58] sm:$0xff]  ;;  %v48_v57 = vld [vmem:[%s2585_s1 + $0x60] sm:$0xff]  ;;  %s1351_s21 = sshll.u32 %s2193_s20, 4  ;;  %s1352_s21 = int_to_ptr.vmem [resolvable:$true] %s1351_s21 }
   0xa   :  { %v165_v39 = vand.u32 4294901760, %v164_v29  ;;  %v172_v40 = vand.u32 4294901760, %v171_v30  ;;  %v179_v41 = vand.u32 4294901760, %v178_v31  ;;  %v199_v42 = vsub.f32 %v2267_v24, %v198_v32  ;;  %v49_v58 = vld [vmem:[%s2585_s1 + $0x68] sm:$0xff]  ;;  %v50_v10 = vld [vmem:[%s2585_s1 + $0x70] sm:$0xff]  ;;  %s2169_s22 = scalar_lea.vmem %s1352_s21, 256  ;;  %p2174_p1 = scmp.lt.s32.totalorder %s1352_s21, %s1352_s21 }
   0xb   :  { %v186_v44 = vand.u32 4294901760, %v185_v33  ;;  %v193_v45 = vand.u32 4294901760, %v192_v35  ;;  %v205_v46 = vand.u32 4294901760, %v2292_v36  ;;  %v2309_v47 = vsub.f32 %v43_v17, %v81_v28  ;;  %1863 = vmatpush3.bf16.msra.mxu1 %v2258_v18  ;;  %v34_v35 = vld [vmem:[%s2584_s0] sm:$0xff]  ;;  %p2170_p0 = scmp.ne.s32.totalorder %s1352_s21, %s2169_s22  ;;  %p2175_p2 = scmp.lt.s32.totalorder %s2169_s22, %s2169_s22 }
   0xc   :  { %v1888_v48 = vpack.c.bf16 %v172_v40, %v165_v39  ;;  %v200_v49 = vand.u32 4294901760, %v199_v42  ;;  %v84_v50 = vand.u32 4294901760, %v44_v37  ;;  %v87_v51 = vand.u32 4294901760, %v45_v38  ;;  %1865 = vmatprep.subr.bf16.mxu1 %v2287_v34 }
   0xd   :  { %v1892_v53 = vpack.c.bf16 %v186_v44, %v179_v41  ;;  %v206_v54 = vsub.f32 %v2292_v36, %v205_v46  ;;  %v212_v55 = vand.u32 4294901760, %v2309_v47  ;;  %v90_v56 = vand.u32 4294901760, %v2306_v43  ;;  %p2176_p3 = por %p2175_p2, %p2174_p1 }
   0xe   :  { %1889 = vmatprep.subr.bf16.mxu0 %v1888_v48  ;;  %v1896_v59 = vpack.c.bf16 %v200_v49, %v193_v45  ;;  %v2327_v60 = vpack.c.bf16 %v81_v28, %v78_v27  ;;  %v2329_v61 = vsub.f32 %v44_v37, %v84_v50  ;;  %v2331_v62 = vsub.f32 %v45_v38, %v87_v51  ;;  %v51_v28 = vld [vmem:[%s2585_s1 + $0x78] sm:$0xff] }
   0xf   :  { %1891 = vmatpush3.bf16.msra.mxu0 %v1888_v48  ;;  %v207_v63 = vand.u32 4294901760, %v206_v54  ;;  %v213_v0 = vsub.f32 %v2309_v47, %v212_v55  ;;  %v93_v1 = vand.u32 4294901760, %v47_v52  ;;  %v2337_v2 = vsub.f32 %v2306_v43, %v90_v56  ;;  %1867 = vmatpush3.bf16.msra.mxu1 %v2287_v34  ;;  %p2177_p4 = pnand %p2176_p3, %p2170_p0 }
  0x10   :  { %1893 = vmatprep.subr.bf16.mxu0 %v1892_v53  ;;  %v219_v3 = vand.u32 4294901760, %v2329_v61  ;;  %v226_v4 = vand.u32 4294901760, %v2331_v62  ;;  %v96_v5 = vand.u32 4294901760, %v48_v57  ;;  %v99_v6 = vand.u32 4294901760, %v49_v58  ;;  %1869 = vmatprep.subr.bf16.mxu1 %v2327_v60 }
  0x11   :  { %v214_v7 = vand.u32 4294901760, %v213_v0  ;;  %v233_v8 = vand.u32 4294901760, %v2337_v2  ;;  %v2344_v9 = vsub.f32 %v47_v52, %v93_v1  ;;  %v2349_v11 = vpack.c.bf16 %v87_v51, %v84_v50 }
  0x12   :  { %v220_v16 = vsub.f32 %v2329_v61, %v219_v3  ;;  %v227_v17 = vsub.f32 %v2331_v62, %v226_v4  ;;  %v2353_v27 = vsub.f32 %v48_v57, %v96_v5  ;;  %v2360_v33 = vsub.f32 %v49_v58, %v99_v6 }
  0x13   :  { %1895 = vmatpush3.bf16.msra.mxu0 %v1892_v53  ;;  %v1900_v29 = vpack.c.bf16 %v214_v7, %v207_v63  ;;  %v234_v30 = vsub.f32 %v2337_v2, %v233_v8  ;;  %v240_v31 = vand.u32 4294901760, %v2344_v9  ;;  %1871 = vmatpush3.bf16.msra.mxu1 %v2327_v60  ;;  %v102_v40 = vand.u32 4294901760, %v50_v10 }
  0x14   :  { %1897 = vmatprep.subr.bf16.mxu0 %v1896_v59  ;;  %v221_v37 = vand.u32 4294901760, %v220_v16  ;;  %v228_v38 = vand.u32 4294901760, %v227_v17  ;;  %v247_v39 = vand.u32 4294901760, %v2353_v27  ;;  %1873 = vmatprep.subr.bf16.mxu1 %v2349_v11  ;;  %v254_v42 = vand.u32 4294901760, %v2360_v33  ;;  %v35_v16 = vld [vmem:[%s2584_s0 + $0x8] sm:$0xff] }
  0x15   :  { %v241_v41 = vsub.f32 %v2344_v9, %v240_v31  ;;  %v105_v43 = vand.u32 4294901760, %v51_v28  ;;  %v2370_v44 = vsub.f32 %v50_v10, %v102_v40  ;;  %v2372_v45 = vand.u32 4294901760, %v34_v35 }
  0x16   :  { %v2374_v48 = vpack.c.bf16 %v93_v1, %v90_v56  ;;  %v235_v49 = vand.u32 4294901760, %v234_v30  ;;  %v248_v50 = vsub.f32 %v2353_v27, %v247_v39  ;;  %v1904_v52 = vpack.c.bf16 %v228_v38, %v221_v37 }
  0x17   :  { %1899 = vmatpush3.bf16.msra.mxu0 %v1896_v59  ;;  %v2377_v51 = vsub.f32 %v51_v28, %v105_v43  ;;  %1875 = vmatpush3.bf16.msra.mxu1 %v2349_v11  ;;  %v242_v53 = vand.u32 4294901760, %v241_v41  ;;  %v255_v54 = vsub.f32 %v2360_v33, %v254_v42  ;;  %v261_v57 = vand.u32 4294901760, %v2370_v44 }
  0x18   :  { %1901 = vmatprep.subr.bf16.mxu0 %v1900_v29  ;;  %1599 = vmatprep.mubr.f32.mxu0 %v2372_v45  ;;  %v2385_v56 = vpack.c.bf16 %v99_v6, %v96_v5  ;;  %v249_v59 = vand.u32 4294901760, %v248_v50  ;;  %v2394_v10 = vpack.c.bf16 %v170_v22, %v163_v21  ;;  %v2400_v5 = vpack.c.bf16 %v184_v25, %v177_v23  ;;  %v754_v50 = vld [vmem:[%s2587_s3 + $0x38] sm:$0xff] }
  0x19   :  { %v268_v58 = vand.u32 4294901760, %v2377_v51  ;;  %1877 = vmatprep.subr.bf16.mxu1 %v2374_v48  ;;  %v1908_v63 = vpack.c.bf16 %v242_v53, %v235_v49  ;;  %v256_v0 = vand.u32 4294901760, %v255_v54  ;;  %v262_v1 = vsub.f32 %v2370_v44, %v261_v57  ;;  %v753_v49 = vld [vmem:[%s2587_s3 + $0x30] sm:$0xff] }
  0x1a   :  { %v2406_v6 = vpack.c.bf16 %v198_v32, %v191_v26  ;;  %v2416_v21 = vpack.c.bf16 %v212_v55, %v205_v46  ;;  %v2418_v22 = vpack.c.bf16 %v226_v4, %v219_v3  ;;  %v2420_v23 = vpack.c.bf16 %v105_v43, %v102_v40 }
  0x1b   :  { %1903 = vmatpush3.bf16.msra.mxu0 %v1900_v29  ;;  %v269_v7 = vsub.f32 %v2377_v51, %v268_v58  ;;  %1879 = vmatpush3.bf16.msra.mxu1 %v2374_v48  ;;  %v2422_v25 = vpack.c.bf16 %v240_v31, %v233_v8  ;;  %v2424_v26 = vpack.c.bf16 %v254_v42, %v247_v39  ;;  %v263_v28 = vand.u32 4294901760, %v262_v1 }
  0x1c   :  { %1905 = vmatprep.subr.bf16.mxu0 %v1904_v52  ;;  %1881 = vmatprep.subr.bf16.mxu1 %v2385_v56  ;;  %v2426_v32 = vpack.c.bf16 %v268_v58, %v261_v57  ;;  %v1912_v17 = vpack.c.bf16 %v256_v0, %v249_v59  ;;  %v2429_v30 = vand.u32 4294901760, %v35_v16  ;;  %v141_v46 = vsub.f32 %v34_v35, %v2372_v45 }
  0x1d   :  { %v270_v29 = vand.u32 4294901760, %v269_v7  ;;  %v1920_v38 = vpack.c.bf16 %v2248_v14, %v2246_v13  ;;  %v1924_v35 = vpack.c.bf16 %v2260_v19, %v2250_v15  ;;  %v1928_v41 = vpack.c.bf16 %v2267_v24, %v2262_v20 }
  0x1e   :  { %v151_v55 = vsub.f32 %v35_v16, %v2429_v30  ;;  %v142_v4 = vand.u32 4294901760, %v141_v46  ;;  %v1932_v13 = vpack.c.bf16 %v2309_v47, %v2292_v36  ;;  %v1936_v14 = vpack.c.bf16 %v2331_v62, %v2329_v61  ;;  %v749_v61 = vld [vmem:[%s2587_s3 + $0x10] sm:$0xff]  ;;  %v750_v62 = vld [vmem:[%s2587_s3 + $0x18] sm:$0xff] }
  0x1f   :  { %1907 = vmatpush3.bf16.msra.mxu0 %v1904_v52  ;;  %1883 = vmatpush3.bf16.msra.mxu1 %v2385_v56  ;;  %v1916_v3 = vpack.c.bf16 %v270_v29, %v263_v28  ;;  %v1940_v15 = vpack.c.bf16 %v2344_v9, %v2337_v2  ;;  %v1944_v19 = vpack.c.bf16 %v2360_v33, %v2353_v27  ;;  %v769_v2 = vand.u32 4294901760, %v749_v61  ;;  %v751_v27 = vld [vmem:[%s2587_s3 + $0x20] sm:$0xff]  ;;  %v752_v33 = vld [vmem:[%s2587_s3 + $0x28] sm:$0xff] }
  0x20   :  { %1909 = vmatprep.subr.bf16.mxu0 %v1908_v63  ;;  %1885 = vmatprep.subr.bf16.mxu1 %v2420_v23  ;;  %v152_v8 = vand.u32 4294901760, %v151_v55  ;;  %v143_v31 = vsub.f32 %v141_v46, %v142_v4  ;;  %v1948_v20 = vpack.c.bf16 %v2377_v51, %v2370_v44  ;;  %v772_v9 = vand.u32 4294901760, %v750_v62 }
  0x21   :  { %v775_v42 = vand.u32 4294901760, %v751_v27  ;;  %v778_v43 = vand.u32 4294901760, %v752_v33  ;;  %v781_v51 = vand.u32 4294901760, %v753_v49  ;;  %v784_v52 = vand.u32 4294901760, %v754_v50 }
  0x22   :  { %v153_v37 = vsub.f32 %v151_v55, %v152_v8  ;;  %v144_v39 = vand.u32 4294901760, %v143_v31  ;;  %v871_v59 = vsub.f32 %v749_v61, %v769_v2  ;;  %vm755_vm0 = vcmask 523264  }
  0x23   :  { %1911 = vmatpush3.bf16.msra.mxu0 %v1908_v63  ;;  %1887 = vmatpush3.bf16.msra.mxu1 %v2420_v23  ;;  %v2534_v44 = vpack.c.bf16 %v778_v43, %v775_v42  ;;  %v2544_v57 = vpack.c.bf16 %v784_v52, %v781_v51  ;;  %v878_v63 = vsub.f32 %v750_v62, %v772_v9 }
  0x24   :  { %1913 = vmatprep.subr.bf16.mxu0 %v1912_v17  ;;  %v154_v40 = vand.u32 4294901760, %v153_v37  ;;  %1564 = vmatprep.mubr.f32.mxu1 %v144_v39  ;;  %v872_v7 = vand.u32 4294901760, %v871_v59 }
  0x26   :  { %1565 = vmatmul.mubr.f32.vlgmr.msra.gmra.mrb[0].mxu1 %v154_v40 }
  0x27   :  { %1915 = vmatpush3.bf16.msra.mxu0 %v1912_v17 }
  0x28   :  { %1917 = vmatprep.subr.bf16.mxu0 %v1916_v3 }
  0x2b   :  { %1919 = vmatpush3.bf16.msra.mxu0 %v1916_v3 }
  0x2c   :  { %1921 = vmatprep.subr.bf16.mxu0 %v1920_v38 }
  0x2e   :  { %1600 = vmatmul.mubr.f32.vlgmr.msra.gmra.mrb[0].mxu0 %v2429_v30 }
  0x2f   :  { %1923 = vmatpush3.bf16.msra.mxu0 %v1920_v38  ;;  %1634 = vmatprep.mubr.f32.mxu0 %v141_v46  ;;  %v906_v46 = vsub.f32 %v754_v50, %v784_v52 }
  0x30   :  { %1925 = vmatprep.subr.bf16.mxu0 %v1924_v35 }
  0x33   :  { %1927 = vmatpush3.bf16.msra.mxu0 %v1924_v35 }
  0x34   :  { %1929 = vmatprep.subr.bf16.mxu0 %v1928_v41 }
  0x37   :  { %1931 = vmatpush3.bf16.msra.mxu0 %v1928_v41 }
  0x38   :  { %1933 = vmatprep.subr.bf16.mxu0 %v1932_v13 }
  0x3b   :  { %1935 = vmatpush3.bf16.msra.mxu0 %v1932_v13  ;;  %v2084_v13 = vpack.c.bf16 %v878_v63, %v871_v59 }
  0x3c   :  { %1937 = vmatprep.subr.bf16.mxu0 %v1936_v14 }
  0x3f   :  { %1939 = vmatpush3.bf16.msra.mxu0 %v1936_v14 }
  0x40   :  { %1941 = vmatprep.subr.bf16.mxu0 %v1940_v15 }
  0x43   :  { %1943 = vmatpush3.bf16.msra.mxu0 %v1940_v15 }
  0x44   :  { %1945 = vmatprep.subr.bf16.mxu0 %v1944_v19 }
  0x47   :  { %1947 = vmatpush3.bf16.msra.mxu0 %v1944_v19 }
  0x48   :  { %1949 = vmatprep.subr.bf16.mxu0 %v1948_v20 }
  0x4b   :  { %1951 = vmatpush3.bf16.msra.mxu0 %v1948_v20 }
  0x4c   :  { %1953 = vmatprep.subr.bf16.mxu0 %v2244_v12 }
  0x4e   :  { %1635 = vmatmul.mubr.f32.vlgmr.msra.gmra.mrb[0].mxu0 %v151_v55 }
  0x4f   :  { %1955 = vmatpush3.bf16.msra.mxu0 %v2244_v12  ;;  %1669 = vmatprep.mubr.f32.mxu0 %v142_v4 }
  0x50   :  { %1957 = vmatprep.subr.bf16.mxu0 %v2258_v18 }
  0x53   :  { %1959 = vmatpush3.bf16.msra.mxu0 %v2258_v18 }
  0x54   :  { %1961 = vmatprep.subr.bf16.mxu0 %v2287_v34 }
  0x57   :  { %1963 = vmatpush3.bf16.msra.mxu0 %v2287_v34 }
  0x58   :  { %1965 = vmatprep.subr.bf16.mxu0 %v2327_v60 }
  0x5b   :  { %1967 = vmatpush3.bf16.msra.mxu0 %v2327_v60 }
  0x5c   :  { %1969 = vmatprep.subr.bf16.mxu0 %v2349_v11 }
  0x5f   :  { %1971 = vmatpush3.bf16.msra.mxu0 %v2349_v11 }
  0x60   :  { %1973 = vmatprep.subr.bf16.mxu0 %v2374_v48 }
  0x63   :  { %1975 = vmatpush3.bf16.msra.mxu0 %v2374_v48 }
  0x64   :  { %1977 = vmatprep.subr.bf16.mxu0 %v2385_v56 }
  0x67   :  { %1979 = vmatpush3.bf16.msra.mxu0 %v2385_v56 }
  0x68   :  { %1981 = vmatprep.subr.bf16.mxu0 %v2420_v23 }
  0x6b   :  { %1983 = vmatpush3.bf16.msra.mxu0 %v2420_v23 }
  0x6c   :  { %1985 = vmatprep.subr.bf16.mxu0 %v2394_v10 }
  0x6e   :  { %1670 = vmatmul.mubr.f32.vlgmr.msra.gmra.mrb[0].mxu0 %v152_v8  ;;  %v907_v8 = vand.u32 4294901760, %v906_v46 }
  0x6f   :  { %1987 = vmatpush3.bf16.msra.mxu0 %v2394_v10  ;;  %1704 = vmatprep.mubr.f32.mxu0 %v2372_v45  ;;  %v879_v10 = vand.u32 4294901760, %v878_v63 }
  0x70   :  { %1989 = vmatprep.subr.bf16.mxu0 %v2400_v5  ;;  %v908_v38 = vsub.f32 %v906_v46, %v907_v8 }
  0x71   :  { %v880_v16 = vsub.f32 %v878_v63, %v879_v10  ;;  %v2116_v20 = vpack.c.bf16 %v879_v10, %v872_v7 }
  0x72   :  { %v909_v40 = vand.u32 4294901760, %v908_v38 }
  0x73   :  { %1991 = vmatpush3.bf16.msra.mxu0 %v2400_v5 }
  0x74   :  { %1993 = vmatprep.subr.bf16.mxu0 %v2406_v6 }
  0x77   :  { %1995 = vmatpush3.bf16.msra.mxu0 %v2406_v6  ;;  %v873_v6 = vsub.f32 %v871_v59, %v872_v7 }
  0x78   :  { %1997 = vmatprep.subr.bf16.mxu0 %v2416_v21 }
  0x7b   :  { %1999 = vmatpush3.bf16.msra.mxu0 %v2416_v21  ;;  %v885_v21 = vsub.f32 %v751_v27, %v775_v42 }
  0x7c   :  { %2001 = vmatprep.subr.bf16.mxu0 %v2418_v22 }
  0x7f   :  { %2003 = vmatpush3.bf16.msra.mxu0 %v2418_v22  ;;  %v892_v22 = vsub.f32 %v752_v33, %v778_v43 }
  0x80   :  { %2005 = vmatprep.subr.bf16.mxu0 %v2422_v25 }
  0x81   :  { %v2088_v14 = vpack.c.bf16 %v892_v22, %v885_v21 }
  0x83   :  { %2007 = vmatpush3.bf16.msra.mxu0 %v2422_v25  ;;  %v881_v25 = vand.u32 4294901760, %v880_v16 }
  0x84   :  { %2009 = vmatprep.subr.bf16.mxu0 %v2424_v26 }
  0x87   :  { %2011 = vmatpush3.bf16.msra.mxu0 %v2424_v26  ;;  %v886_v26 = vand.u32 4294901760, %v885_v21 }
  0x88   :  { %2013 = vmatprep.subr.bf16.mxu0 %v2426_v32 }
  0x89   :  { %v887_v28 = vsub.f32 %v885_v21, %v886_v26 }
  0x8b   :  { %2015 = vmatpush3.bf16.msra.mxu0 %v2426_v32  ;;  %v893_v32 = vand.u32 4294901760, %v892_v22  ;;  %v888_v55 = vand.u32 4294901760, %v887_v28 }
  0x8c   :  { %2017 = vmatprep.subr.bf16.mxu0 %v2244_v12 }
  0x8d   :  { %v894_v29 = vsub.f32 %v892_v22, %v893_v32 }
  0x8e   :  { %1705 = vmatmul.mubr.f32.vlgmr.msra.gmra.mrb[0].mxu0 %v2429_v30 }
  0x8f   :  { %2019 = vmatpush3.bf16.msra.mxu0 %v2244_v12  ;;  %1739 = vmatprep.mubr.f32.mxu0 %v2372_v45  ;;  %v747_v12 = vld [vmem:[%s2587_s3] sm:$0xff]  ;;  %v895_v3 = vand.u32 4294901760, %v894_v29 }
  0x90   :  { %2021 = vmatprep.subr.bf16.mxu0 %v2258_v18 }
  0x91   :  { %v2072_v31 = vpack.c.bf16 %v895_v3, %v888_v55 }
  0x93   :  { %2023 = vmatpush3.bf16.msra.mxu0 %v2258_v18  ;;  %v748_v18 = vld [vmem:[%s2587_s3 + $0x8] sm:$0xff] }
  0x94   :  { %2025 = vmatprep.subr.bf16.mxu0 %v2287_v34  ;;  %v766_v36 = vand.u32 4294901760, %v748_v18 }
  0x97   :  { %2027 = vmatpush3.bf16.msra.mxu0 %v2287_v34  ;;  %v763_v34 = vand.u32 4294901760, %v747_v12 }
  0x98   :  { %2029 = vmatprep.subr.bf16.mxu0 %v2327_v60 }
  0x99   :  { %v857_v45 = vsub.f32 %v747_v12, %v763_v34  ;;  %v2120_v12 = vpack.c.bf16 %v893_v32, %v886_v26 }
  0x9b   :  { %2031 = vmatpush3.bf16.msra.mxu0 %v2327_v60  ;;  %v2514_v60 = vpack.c.bf16 %v766_v36, %v763_v34  ;;  %v858_v53 = vand.u32 4294901760, %v857_v45  ;;  %v1363_v34 = vld [vmem:[%s2586_s2] ss:$0 sm:$0xff] }
  0x9c   :  { %2033 = vmatprep.subr.bf16.mxu0 %v2349_v11 }
  0x9d   :  { %2049 = vmatprep.subr.bf16.mxu1 %v2514_v60  ;;  %v859_v58 = vsub.f32 %v857_v45, %v858_v53 }
  0x9e   :  { %2051 = vmatpush3.bf16.msra.mxu1 %v2514_v60 }
  0x9f   :  { %2035 = vmatpush3.bf16.msra.mxu0 %v2349_v11  ;;  %v2524_v11 = vpack.c.bf16 %v772_v9, %v769_v2  ;;  %v860_v0 = vand.u32 4294901760, %v859_v58 }
  0xa0   :  { %2037 = vmatprep.subr.bf16.mxu0 %v2374_v48 }
  0xa1   :  { %2053 = vmatprep.subr.bf16.mxu1 %v2524_v11 }
  0xa2   :  { %2055 = vmatpush3.bf16.msra.mxu1 %v2524_v11 }
  0xa3   :  { %2039 = vmatpush3.bf16.msra.mxu0 %v2374_v48  ;;  %v864_v48 = vsub.f32 %v748_v18, %v766_v36  ;;  %2057 = vmatprep.subr.bf16.mxu1 %v2534_v44 }
  0xa4   :  { %2041 = vmatprep.subr.bf16.mxu0 %v2385_v56 }
  0xa5   :  { %v865_v54 = vand.u32 4294901760, %v864_v48  ;;  %v2080_v41 = vpack.c.bf16 %v864_v48, %v857_v45 }
  0xa6   :  { %2059 = vmatpush3.bf16.msra.mxu1 %v2534_v44 }
  0xa7   :  { %2043 = vmatpush3.bf16.msra.mxu0 %v2385_v56  ;;  %v866_v56 = vsub.f32 %v864_v48, %v865_v54  ;;  %2061 = vmatprep.subr.bf16.mxu1 %v2544_v57  ;;  %v2112_v19 = vpack.c.bf16 %v865_v54, %v858_v53 }
  0xa8   :  { %2045 = vmatprep.subr.bf16.mxu0 %v2420_v23 }
  0xa9   :  { %v867_v1 = vand.u32 4294901760, %v866_v56 }
  0xaa   :  { %2063 = vmatpush3.bf16.msra.mxu1 %v2544_v57 }
  0xab   :  { %2047 = vmatpush3.bf16.msra.mxu0 %v2420_v23  ;;  %v2064_v5 = vpack.c.bf16 %v867_v1, %v860_v0  ;;  %v874_v23 = vand.u32 4294901760, %v873_v6 }
  0xad   :  { %2065 = vmatprep.subr.bf16.mxu1 %v2064_v5  ;;  %v2068_v17 = vpack.c.bf16 %v881_v25, %v874_v23 }
  0xae   :  { %1740 = vmatmul.mubr.f32.vlgmr.msra.gmra.mrb[0].mxu0 %v2429_v30  ;;  %v899_v30 = vsub.f32 %v753_v49, %v781_v51 }
  0xb0   :  { %v900_v4 = vand.u32 4294901760, %v899_v30  ;;  %v2092_v15 = vpack.c.bf16 %v906_v46, %v899_v30 }
  0xb2   :  { %v901_v37 = vsub.f32 %v899_v30, %v900_v4  ;;  %v2124_v18 = vpack.c.bf16 %v907_v8, %v900_v4 }
  0xb4   :  { %v902_v39 = vand.u32 4294901760, %v901_v37 }
  0xb6   :  { %v2076_v35 = vpack.c.bf16 %v909_v40, %v902_v39 }
  0xf9   :  { %v2510_v24 = vpop.f32.mrb[0].mxu1 }
  0xfa   :  { %v2512_v47 = vpop.f32.mrb[1].mxu1  ;;  %v157_v36 = vadd.f32 %v2510_v24, %v1363_v34 }
  0xfb   :  { %v147_v61 = vadd.f32 %v1363_v34, %v2512_v47  ;;  %v1362_v47 = vld [vmem:[%s2588_s4] ss:$0 sm:$0xff] }
 0x181   :  { %v1741_v62 = vpop.f32.mrb[0].mxu0 }
 0x182   :  { %v2145_v2 = vadd.f32 %v1741_v62, %v157_v36  ;;  %v733_v9 = vpop.f32.mrb[1].mxu0 }
 0x183   :  { %v2147_v27 = vadd.f32 %v733_v9, %v147_v61 }
 0x184   :  { %v744_v33 = vmax.f32 %v2145_v2, 0.0 }
 0x185   :  { %v743_v42 = vmax.f32 %v2147_v27, 0.0 }
 0x186   :  { %v760_v43 = vsel %vm755_vm0, %v744_v33, 0 }
 0x187   :  { %v845_v45 = vand.u32 4294901760, %v760_v43  ;;  %v757_v48 = vsel %vm755_vm0, %v743_v42, 0 }
 0x188   :  { %v835_v49 = vand.u32 4294901760, %v757_v48 }
 0x189   :  { %v846_v50 = vsub.f32 %v760_v43, %v845_v45 }
 0x18a   :  { %v836_v51 = vsub.f32 %v757_v48, %v835_v49 }
 0x18b   :  { %v847_v52 = vand.u32 4294901760, %v846_v50 }
 0x18c   :  { %v837_v53 = vand.u32 4294901760, %v836_v51 }
 0x18d   :  { %v848_v54 = vsub.f32 %v846_v50, %v847_v52 }
 0x18e   :  { %v838_v58 = vsub.f32 %v836_v51, %v837_v53 }
 0x18f   :  { %v849_v56 = vand.u32 4294901760, %v848_v54 }
 0x190   :  { %v839_v24 = vand.u32 4294901760, %v838_v58 }
 0x192   :  { %1758 = vmatprep.mubr.f32.mxu1 %v839_v24 }
 0x193   :  { %1759 = vmatmul.mubr.f32.vlgmr.msra.gmra.mrb[2].mxu1 %v849_v56 }
 0x194   :  { %2067 = vmatpush3.bf16.msra.mxu1 %v2064_v5  ;;  %1777 = vmatprep.mubr.f32.mxu1 %v835_v49 }
 0x195   :  { %2069 = vmatprep.subr.bf16.mxu1 %v2068_v17 }
 0x198   :  { %2071 = vmatpush3.bf16.msra.mxu1 %v2068_v17 }
 0x199   :  { %2073 = vmatprep.subr.bf16.mxu1 %v2072_v31 }
 0x19c   :  { %2075 = vmatpush3.bf16.msra.mxu1 %v2072_v31 }
 0x19d   :  { %2077 = vmatprep.subr.bf16.mxu1 %v2076_v35 }
 0x1a0   :  { %2079 = vmatpush3.bf16.msra.mxu1 %v2076_v35 }
 0x1a1   :  { %2081 = vmatprep.subr.bf16.mxu1 %v2080_v41 }
 0x1a3   :  { %1778 = vmatmul.mubr.f32.vlgmr.msra.gmra.mrb[2].mxu1 %v845_v45 }
 0x1a4   :  { %2083 = vmatpush3.bf16.msra.mxu1 %v2080_v41  ;;  %1796 = vmatprep.mubr.f32.mxu1 %v836_v51 }
 0x1a5   :  { %2085 = vmatprep.subr.bf16.mxu1 %v2084_v13 }
 0x1a8   :  { %2087 = vmatpush3.bf16.msra.mxu1 %v2084_v13 }
 0x1a9   :  { %2089 = vmatprep.subr.bf16.mxu1 %v2088_v14 }
 0x1ac   :  { %2091 = vmatpush3.bf16.msra.mxu1 %v2088_v14 }
 0x1ad   :  { %2093 = vmatprep.subr.bf16.mxu1 %v2092_v15 }
 0x1b0   :  { %2095 = vmatpush3.bf16.msra.mxu1 %v2092_v15 }
 0x1b1   :  { %2097 = vmatprep.subr.bf16.mxu1 %v2514_v60 }
 0x1b3   :  { %1797 = vmatmul.mubr.f32.vlgmr.msra.gmra.mrb[2].mxu1 %v846_v50 }
 0x1b4   :  { %2099 = vmatpush3.bf16.msra.mxu1 %v2514_v60  ;;  %1815 = vmatprep.mubr.f32.mxu1 %v837_v53 }
 0x1b5   :  { %2101 = vmatprep.subr.bf16.mxu1 %v2524_v11 }
 0x1b8   :  { %2103 = vmatpush3.bf16.msra.mxu1 %v2524_v11 }
 0x1b9   :  { %2105 = vmatprep.subr.bf16.mxu1 %v2534_v44 }
 0x1bc   :  { %2107 = vmatpush3.bf16.msra.mxu1 %v2534_v44 }
 0x1bd   :  { %2109 = vmatprep.subr.bf16.mxu1 %v2544_v57 }
 0x1c0   :  { %2111 = vmatpush3.bf16.msra.mxu1 %v2544_v57 }
 0x1c1   :  { %2113 = vmatprep.subr.bf16.mxu1 %v2112_v19 }
 0x1c3   :  { %1816 = vmatmul.mubr.f32.vlgmr.msra.gmra.mrb[2].mxu1 %v847_v52 }
 0x1c4   :  { %2115 = vmatpush3.bf16.msra.mxu1 %v2112_v19  ;;  %1834 = vmatprep.mubr.f32.mxu1 %v835_v49 }
 0x1c5   :  { %2117 = vmatprep.subr.bf16.mxu1 %v2116_v20 }
 0x1c8   :  { %2119 = vmatpush3.bf16.msra.mxu1 %v2116_v20 }
 0x1c9   :  { %2121 = vmatprep.subr.bf16.mxu1 %v2120_v12 }
 0x1cc   :  { %2123 = vmatpush3.bf16.msra.mxu1 %v2120_v12 }
 0x1cd   :  { %2125 = vmatprep.subr.bf16.mxu1 %v2124_v18 }
 0x1d0   :  { %2127 = vmatpush3.bf16.msra.mxu1 %v2124_v18 }
 0x1d1   :  { %2129 = vmatprep.subr.bf16.mxu1 %v2514_v60 }
 0x1d3   :  { %1835 = vmatmul.mubr.f32.vlgmr.msra.gmra.mrb[2].mxu1 %v845_v45 }
 0x1d4   :  { %2131 = vmatpush3.bf16.msra.mxu1 %v2514_v60  ;;  %1853 = vmatprep.mubr.f32.mxu1 %v835_v49 }
 0x1d5   :  { %2133 = vmatprep.subr.bf16.mxu1 %v2524_v11 }
 0x1d8   :  { %2135 = vmatpush3.bf16.msra.mxu1 %v2524_v11 }
 0x1d9   :  { %2137 = vmatprep.subr.bf16.mxu1 %v2534_v44 }
 0x1dc   :  { %2139 = vmatpush3.bf16.msra.mxu1 %v2534_v44 }
 0x1dd   :  { %2141 = vmatprep.subr.bf16.mxu1 %v2544_v57 }
 0x1e0   :  { %2143 = vmatpush3.bf16.msra.mxu1 %v2544_v57 }
 0x1e3   :  { %1854 = vmatmul.mubr.f32.vlgmr.msra.gmra.mrb[2].mxu1 %v845_v45 }
 0x2b6   :  { %v1855_v60 = vpop.f32.mrb[2].mxu1 }
 0x2b7   :  { %v1343_v59 = vadd.f32 %v1855_v60, %v1362_v47  ;;  %v1332_v63 = vpop.f32.mrb[3].mxu1 }
 0x2b8   :  { %v1342_v11 = vadd.f32 %v1362_v47, %v1332_v63 }
 0x2b9   :  { %1345 = vst [vmem:[#allocation2 + $0x8] sm:$0xff] %v1343_v59 }
 0x2ba   :  { %1344 = vst [vmem:[#allocation2] sm:$0xff] %v1342_v11 }
 0x2bb   :  { %2180 = shalt.err (!%p2177_p4)
}
 0x2bc   :  { %s2181_s4 = scalar_lea.hbm %s2589_s5, 256 }
 0x2bd   :  { %p2182_p5 = scmp.ne.s32.totalorder %s2589_s5, %s2181_s4  ;;  %p2185_p6 = scmp.lt.u32.totalorder %s2181_s4, %s2589_s5 }
 0x2bf   :  { %p2187_p7 = pnand %p2185_p6, %p2182_p5 }
 0x2c1   :  { %2190 = shalt.err (!%p2187_p7)
}
 0x2c2   :  { %s2194_s0 = smov 128   ;;  %s2195_s28 = smov 8  }
 0x2c3   :  { %1357 = dma.vmem_to_hbm [thread:$0]  %s1352_s21, 256, %s2589_s5, [#allocation3], %s2194_s0, %s2194_s0, %s2195_s28  }
 0x2c4   :  { %2191 = dma.done.wait [#allocation3], 256  }
 0x2c5   :  { %2192 = vsyncadd [#allocation3], 4294967040 }
 0x2c6   :  { %1361 = vsyncpa [#allocation3], 1 }

</bundles_post_ra>
